<compile_context>
chip_gen: v5e
topology: v5e:2x2
jax: 0.10.0
libtpu: 0.0.40
codegen_flags: <defaults>
</compile_context>

<pallas_src>
import jax
import jax.numpy as jnp
from jax.experimental import pallas as pl
from jax.experimental.pallas import tpu as pltpu


def _stacked_linear_kernel(w_ref, b_ref, x_ref, o_ref):
    """All L layers in one invocation.

    w_ref: (L, in=8, out=8)  -- already transposed from PyTorch (out, in)
    b_ref: (L, 8)
    x_ref: (bt, 8) batch tile of the input
    o_ref: (bt, 8) batch tile of the output
    """
    num_layers = w_ref.shape[0]
    acc = x_ref[...].astype(jnp.float32)          # carried in vregs, not VMEM
    for l in range(num_layers):                    # statically unrolled layer loop
        acc = jnp.dot(acc, w_ref[l], preferred_element_type=jnp.float32) + b_ref[l]
    o_ref[...] = acc.astype(o_ref.dtype)


def stacked_linear(x, weights, biases, *, batch_tile=256):
    """Apply L sequential Linear(8, 8) layers (PyTorch semantics: y = x @ W.T + b).

    x:       (B, 8)     float32
    weights: (L, 8, 8)  float32, weights[l] is nn.Linear .weight in (out, in) layout
    biases:  (L, 8)     float32
    """
    L, F_out, F_in = weights.shape
    B, F = x.shape

    # One-time layout plumbing in the wrapper: (L, out, in) -> (L, in, out)
    # so the kernel never transposes on its serial dependency chain.
    wt = jnp.swapaxes(weights, -1, -2)

    # Batch tiling: parallel across TensorCores when B is large; degenerate
    # (single full-array block) for small B such as the B=2 test case.
    bt = min(batch_tile, B)
    if B % bt != 0:
        bt = B
    grid = (B // bt,)

    return pl.pallas_call(
        _stacked_linear_kernel,
        out_shape=jax.ShapeDtypeStruct((B, F), x.dtype),
        grid_spec=pltpu.PrefetchScalarGridSpec(
            num_scalar_prefetch=0,
            grid=grid,
            in_specs=[
                pl.BlockSpec((L, F_in, F_out), lambda i: (0, 0, 0)),  # all weights resident
                pl.BlockSpec((L, F_out), lambda i: (0, 0)),           # all biases resident
                pl.BlockSpec((bt, F), lambda i: (i, 0)),              # batch tile of x
            ],
            out_specs=pl.BlockSpec((bt, F), lambda i: (i, 0)),        # batch tile of y
        ),
        compiler_params=pltpu.CompilerParams(
            dimension_semantics=("parallel",),  # batch tiles are independent
        ),
    )(wt, biases, x)


if __name__ == "__main__":
    num_layers = 4
    B, F = 2, 8

    key = jax.random.PRNGKey(0)
    kw, kb, kx = jax.random.split(key, 3)

    # Deterministic parameter init (shapes match nn.Linear(8, 8) per layer).
    bound = 1.0 / jnp.sqrt(F)
    weights = jax.random.uniform(kw, (num_layers, F, F), jnp.float32, -bound, bound)
    biases = jax.random.uniform(kb, (num_layers, F), jnp.float32, -bound, bound)
    x = jax.random.normal(kx, (B, F), jnp.float32)

    out = stacked_linear(x, weights, biases)
    out = jax.block_until_ready(out)

    # Pure-JAX reference (PyTorch semantics: y = x @ W.T + b, applied per layer).
    ref = x
    for l in range(num_layers):
        ref = ref @ weights[l].T + biases[l]
    assert jnp.allclose(out, ref, atol=1e-5, rtol=1e-5), "mismatch vs reference"

    print("KERNEL_OK")
</pallas_src>

<mosaic_0001>
module attributes {stable_mosaic.version = 11 : i64} {
  func.func @_stacked_linear_kernel(%arg0: i32, %arg1: memref<4x8x8xf32, #tpu.memory_space<vmem>>, %arg2: memref<4x8xf32, #tpu.memory_space<vmem>>, %arg3: memref<2x8xf32, #tpu.memory_space<vmem>>, %arg4: memref<2x8xf32, #tpu.memory_space<vmem>>) attributes {dimension_semantics = [#tpu.dimension_semantics<parallel>], iteration_bounds = array<i64: 1>, scalar_prefetch = 0 : i64, scratch_operands = 0 : i64, tpu.core_type = #tpu.core_type<tc>, window_params = [{pipeline_mode = #tpu.pipeline_mode<synchronous>, transform_indices = @transform_0, window_bounds = array<i64: 4, 8, 8>}, {pipeline_mode = #tpu.pipeline_mode<synchronous>, transform_indices = @transform_1, window_bounds = array<i64: 4, 8>}, {transform_indices = @transform_2, window_bounds = array<i64: 2, 8>}, {transform_indices = @transform_3, window_bounds = array<i64: 2, 8>}]} {
    %c0 = arith.constant 0 : index
    %c0_0 = arith.constant 0 : index
    %0 = vector.load %arg3[%c0, %c0_0] : memref<2x8xf32, #tpu.memory_space<vmem>>, vector<2x8xf32>
    %c0_1 = arith.constant 0 : index
    %c0_2 = arith.constant 0 : index
    %c0_3 = arith.constant 0 : index
    %1 = vector.load %arg1[%c0_1, %c0_2, %c0_3] : memref<4x8x8xf32, #tpu.memory_space<vmem>>, vector<1x8x8xf32>
    %2 = vector.shape_cast %1 : vector<1x8x8xf32> to vector<8x8xf32>
    %cst = arith.constant dense<0.000000e+00> : vector<2x8xf32>
    %3 = tpu.matmul %0, %2, %cst {dimension_numbers = #tpu.dot_dimension_numbers<[1], [0], [0], [1], [0, 0, 1, 1], [], []>} : vector<2x8xf32>, vector<8x8xf32>, vector<2x8xf32> -> vector<2x8xf32>
    %c0_4 = arith.constant 0 : index
    %c0_5 = arith.constant 0 : index
    %4 = vector.load %arg2[%c0_4, %c0_5] : memref<4x8xf32, #tpu.memory_space<vmem>>, vector<1x8xf32>
    %5 = vector.shape_cast %4 : vector<1x8xf32> to vector<8xf32>
    %6 = vector.shape_cast %5 : vector<8xf32> to vector<1x8xf32>
    %7 = vector.broadcast %6 : vector<1x8xf32> to vector<2x8xf32>
    %8 = arith.addf %3, %7 : vector<2x8xf32>
    %c1 = arith.constant 1 : index
    %c0_6 = arith.constant 0 : index
    %c0_7 = arith.constant 0 : index
    %9 = vector.load %arg1[%c1, %c0_6, %c0_7] : memref<4x8x8xf32, #tpu.memory_space<vmem>>, vector<1x8x8xf32>
    %10 = vector.shape_cast %9 : vector<1x8x8xf32> to vector<8x8xf32>
    %cst_8 = arith.constant dense<0.000000e+00> : vector<2x8xf32>
    %11 = tpu.matmul %8, %10, %cst_8 {dimension_numbers = #tpu.dot_dimension_numbers<[1], [0], [0], [1], [0, 0, 1, 1], [], []>} : vector<2x8xf32>, vector<8x8xf32>, vector<2x8xf32> -> vector<2x8xf32>
    %c1_9 = arith.constant 1 : index
    %c0_10 = arith.constant 0 : index
    %12 = vector.load %arg2[%c1_9, %c0_10] : memref<4x8xf32, #tpu.memory_space<vmem>>, vector<1x8xf32>
    %13 = vector.shape_cast %12 : vector<1x8xf32> to vector<8xf32>
    %14 = vector.shape_cast %13 : vector<8xf32> to vector<1x8xf32>
    %15 = vector.broadcast %14 : vector<1x8xf32> to vector<2x8xf32>
    %16 = arith.addf %11, %15 : vector<2x8xf32>
    %c2 = arith.constant 2 : index
    %c0_11 = arith.constant 0 : index
    %c0_12 = arith.constant 0 : index
    %17 = vector.load %arg1[%c2, %c0_11, %c0_12] : memref<4x8x8xf32, #tpu.memory_space<vmem>>, vector<1x8x8xf32>
    %18 = vector.shape_cast %17 : vector<1x8x8xf32> to vector<8x8xf32>
    %cst_13 = arith.constant dense<0.000000e+00> : vector<2x8xf32>
    %19 = tpu.matmul %16, %18, %cst_13 {dimension_numbers = #tpu.dot_dimension_numbers<[1], [0], [0], [1], [0, 0, 1, 1], [], []>} : vector<2x8xf32>, vector<8x8xf32>, vector<2x8xf32> -> vector<2x8xf32>
    %c2_14 = arith.constant 2 : index
    %c0_15 = arith.constant 0 : index
    %20 = vector.load %arg2[%c2_14, %c0_15] : memref<4x8xf32, #tpu.memory_space<vmem>>, vector<1x8xf32>
    %21 = vector.shape_cast %20 : vector<1x8xf32> to vector<8xf32>
    %22 = vector.shape_cast %21 : vector<8xf32> to vector<1x8xf32>
    %23 = vector.broadcast %22 : vector<1x8xf32> to vector<2x8xf32>
    %24 = arith.addf %19, %23 : vector<2x8xf32>
    %c3 = arith.constant 3 : index
    %c0_16 = arith.constant 0 : index
    %c0_17 = arith.constant 0 : index
    %25 = vector.load %arg1[%c3, %c0_16, %c0_17] : memref<4x8x8xf32, #tpu.memory_space<vmem>>, vector<1x8x8xf32>
    %26 = vector.shape_cast %25 : vector<1x8x8xf32> to vector<8x8xf32>
    %cst_18 = arith.constant dense<0.000000e+00> : vector<2x8xf32>
    %27 = tpu.matmul %24, %26, %cst_18 {dimension_numbers = #tpu.dot_dimension_numbers<[1], [0], [0], [1], [0, 0, 1, 1], [], []>} : vector<2x8xf32>, vector<8x8xf32>, vector<2x8xf32> -> vector<2x8xf32>
    %c3_19 = arith.constant 3 : index
    %c0_20 = arith.constant 0 : index
    %28 = vector.load %arg2[%c3_19, %c0_20] : memref<4x8xf32, #tpu.memory_space<vmem>>, vector<1x8xf32>
    %29 = vector.shape_cast %28 : vector<1x8xf32> to vector<8xf32>
    %30 = vector.shape_cast %29 : vector<8xf32> to vector<1x8xf32>
    %31 = vector.broadcast %30 : vector<1x8xf32> to vector<2x8xf32>
    %32 = arith.addf %27, %31 : vector<2x8xf32>
    %c0_21 = arith.constant 0 : index
    %c0_22 = arith.constant 0 : index
    %33 = vector.load %arg4[%c0_21, %c0_22] : memref<2x8xf32, #tpu.memory_space<vmem>>, vector<2x8xf32>
    tpu.vector_store %arg4[%c0_21, %c0_22], %32 {strides = array<i32>} : memref<2x8xf32, #tpu.memory_space<vmem>>, vector<2x8xf32>,
    return
  }
  func.func @transform_0(%arg0: i32) -> (i32, i32, i32) {
    %c0_i32 = arith.constant 0 : i32
    %c0_i32_0 = arith.constant 0 : i32
    %c0_i32_1 = arith.constant 0 : i32
    %c0_i32_2 = arith.constant 0 : i32
    return %c0_i32, %c0_i32_0, %c0_i32_1 : i32, i32, i32
  }
  func.func @transform_1(%arg0: i32) -> (i32, i32) {
    %c0_i32 = arith.constant 0 : i32
    %c0_i32_0 = arith.constant 0 : i32
    %c0_i32_1 = arith.constant 0 : i32
    return %c0_i32, %c0_i32_0 : i32, i32
  }
  func.func @transform_2(%arg0: i32) -> (i32, i32) {
    %c0_i32 = arith.constant 0 : i32
    %c0_i32_0 = arith.constant 0 : i32
    return %arg0, %c0_i32 : i32, i32
  }
  func.func @transform_3(%arg0: i32) -> (i32, i32) {
    %c0_i32 = arith.constant 0 : i32
    %c0_i32_0 = arith.constant 0 : i32
    return %arg0, %c0_i32 : i32, i32
  }
}

</mosaic_0001>

<bundles_post_ra>
// kernel: tpu_custom_call.1
= control target key start
LH: loop header
LB: loop body
LE: loop exit
PB: predicated region body
PF: predicated region fallthrough
CT: control target
= control target key end

     0   :  { %8 = vsyncpa [#allocation3], 0  ;;  %s345_s0 = inlined_call_operand.hbm [shape: f32[4,8,8], index: 0, kind: input, shape index: {}]   ;;  %s346_s1 = inlined_call_operand.hbm [shape: f32[4,8], index: 1, kind: input, shape index: {}]   ;;  %s347_s2 = inlined_call_operand.hbm [shape: f32[2,8], index: 2, kind: input, shape index: {}]   ;;  %s348_s3 = inlined_call_operand.hbm [shape: f32[2,8], index: 3, kind: output, shape index: {}]  }
   0x1   :  { %9 = vsyncpa [#allocation6], 0  ;;  %s29_s14 = sshll.u32 %s346_s1, 4  ;;  %s30_s14 = int_to_ptr.hbm [resolvable:$true] %s29_s14 }
   0x2   :  { %10 = vsyncpa [#allocation4], 0  ;;  %s303_s15 = smov [#allocation5]   ;;  %s15_s19 = sshll.u32 %s345_s0, 4  ;;  %s16_s19 = int_to_ptr.hbm [resolvable:$true] %s15_s19 }
   0x3   :  { %s31_s16 = sshll.u32 %s303_s15, 4  ;;  %s304_s20 = smov [#allocation2]   ;;  %s32_s16 = int_to_ptr.vmem [resolvable:$true] %s31_s16 }
   0x4   :  { %34 = dma.hbm_to_vmem [thread:$0]  %s30_s14, 64, %s32_s16, [#allocation6]  }
   0x5   :  { %s17_s21 = sshll.u32 %s304_s20, 4  ;;  %s305_s22 = smov 128   ;;  %s18_s21 = int_to_ptr.vmem [resolvable:$true] %s17_s21 }
   0x6   :  { %s306_s23 = smov 8   ;;  %s40_s1 = sshll.u32 %s347_s2, 4  ;;  %s41_s1 = int_to_ptr.hbm [resolvable:$true] %s40_s1 }
   0x7   :  { %23 = dma.hbm_to_vmem [thread:$0]  %s16_s19, 512, %s18_s21, [#allocation3], %s305_s22, %s305_s22, %s306_s23  }
   0x8   :  { %s307_s26 = smov [#allocation7]  }
   0x9   :  { %s42_s27 = sshll.u32 %s307_s26, 4  ;;  %s43_s27 = int_to_ptr.vmem [resolvable:$true] %s42_s27 }
   0xa   :  { %45 = dma.hbm_to_vmem [thread:$0]  %s41_s1, 32, %s43_s27, [#allocation6]  }
   0xb   :  { %297 = dma.done.wait [#allocation3], 512  }
   0xc   :  { %298 = vsyncadd [#allocation3], 4294966784 }
   0xd   :  { %299 = dma.done.wait [#allocation6], 96  }
   0xe   :  { %300 = vsyncadd [#allocation6], 4294967200  ;;  %vm62_vm0 = vcmask 64512   ;;  %v59_v0 = vld [vmem:[#allocation2] sm:$0xff]  ;;  %v87_v2 = vld [vmem:[#allocation2 + $0x8] sm:$0xff]  ;;  %s308_s0 = smov [#allocation8]  }
   0xf   :  { %v58_v1 = vld [vmem:[#allocation7] sm:$0x3]  ;;  %81 = vmatpush.msra.mxu0 %v59_v0  ;;  %108 = vmatpush.msra.mxu1 %v87_v2  ;;  %v197_v3 = vld [vmem:[#allocation5] ss:$0 sm:$0xff]  ;;  %v114_v6 = vld [vmem:[#allocation2 + $0x10] sm:$0xff]  ;;  %s174_s2 = sshll.u32 %s308_s0, 4  ;;  %s175_s2 = int_to_ptr.vmem [resolvable:$true] %s174_s2 }
  0x10   :  { %187 = vmatmul.msk.f32.vlgmr.msra.gmra.mxu0 %vm62_vm0, %v58_v1  ;;  %135 = vmatpush.msra.mxu2 %v114_v6  ;;  %v198_v7 = vld [vmem:[#allocation5 + $0x1] ss:$0 sm:$0xff]  ;;  %v141_v10 = vld [vmem:[#allocation2 + $0x18] sm:$0xff]  ;;  %v199_v11 = vld [vmem:[#allocation5 + $0x2] ss:$0 sm:$0xff]  ;;  %s176_s30 = sshll.u32 %s348_s3, 4  ;;  %s177_s30 = int_to_ptr.hbm [resolvable:$true] %s176_s30 }
  0x11   :  { %162 = vmatpush.msra.mxu3 %v141_v10  ;;  %v200_v14 = vld [vmem:[#allocation5 + $0x3] ss:$0 sm:$0xff]  ;;  %vm167_vm1 = vcmask 58368  }
  0x8d   :  { %v83_v4 = vpop.f32.mrf.mxu0 }
  0x8e   :  { %v84_v5 = vadd.f32 %v197_v3, %v83_v4 }
  0x90   :  { %188 = vmatmul.msk.f32.vlgmr.msra.gmra.mxu1 %vm62_vm0, %v84_v5 }
 0x10d   :  { %v110_v8 = vpop.f32.mrf.mxu1 }
 0x10e   :  { %v111_v9 = vadd.f32 %v198_v7, %v110_v8 }
 0x110   :  { %189 = vmatmul.msk.f32.vlgmr.msra.gmra.mxu2 %vm62_vm0, %v111_v9 }
 0x193   :  { %v137_v12 = vpop.f32.mrf.mxu2 }
 0x194   :  { %v138_v13 = vadd.f32 %v199_v11, %v137_v12 }
 0x196   :  { %190 = vmatmul.msk.f32.vlgmr.msra.gmra.mxu3 %vm62_vm0, %v138_v13 }
 0x219   :  { %v164_v15 = vpop.f32.mrf.mxu3 }
 0x21a   :  { %v165_v16 = vadd.f32 %v200_v14, %v164_v15 }
 0x21c   :  { %168 = vst.msk [vmem:[#allocation8] sm:$0x3] %vm167_vm1, %v165_v16 }
 0x21d   :  { %179 = dma.vmem_to_hbm [thread:$0]  %s175_s2, 32, %s177_s30, [#allocation4]  }
 0x21e   :  { %301 = dma.done.wait [#allocation4], 32  }
 0x21f   :  { %302 = vsyncadd [#allocation4], 4294967264 }
 0x220   :  { %184 = vsyncpa [#allocation3], 1 }
 0x221   :  { %185 = vsyncpa [#allocation6], 1 }
 0x222   :  { %186 = vsyncpa [#allocation4], 1 }

</bundles_post_ra>
